<compile_context>
chip_gen: v6e
topology: v6e:2x2x1
jax: 0.10.0
libtpu: 0.0.40
codegen_flags: <defaults>
</compile_context>

<pallas_src>
import functools

import jax
import jax.numpy as jnp
from jax.experimental import pallas as pl
from jax.experimental.pallas import tpu as pltpu

_LANE = 128
_SUB = 8
_VMEM_LIMIT_BYTES = 48 * 1024 * 1024   # explicit budget; headroom in v7x's 64 MiB


def _round_up(v: int, m: int) -> int:
    return ((v + m - 1) // m) * m


def _plan_dim(dim: int, multiple: int, target: int):
    """Return (tile, padded_dim) for tiling `dim` with tiles of ~`target`.

    Either tile == padded_dim (single full-span block, any size is legal for
    the (8,128) rule), or tile is a multiple of `multiple` that divides
    padded_dim.  padded_dim >= dim; the caller zero-pads the array."""
    if dim <= max(target, multiple):
        return dim, dim
    start = max(multiple, (target // multiple) * multiple)
    t = start
    while t >= multiple:
        if dim % t == 0:
            return t, dim
        t -= multiple
    padded = _round_up(dim, multiple)
    t = start
    while padded % t:
        t -= multiple
    return t, padded


def _pick_divisor_tile(dim: int, multiple: int, target: int) -> int:
    """Tile that divides `dim` (never pads): a multiple of `multiple` <= target,
    or the full dim as a fallback (full-span blocks are always legal)."""
    if dim <= max(target, multiple):
        return dim
    t = max(multiple, (target // multiple) * multiple)
    while t >= multiple:
        if dim % t == 0:
            return t
        t -= multiple
    return dim


def _plan_trunk_n(n: int, target: int = 512):
    """N (query-point) tiling for the fused trunk kernel.

    Small N: one full block, padded to a sublane multiple so the in-kernel
    (tb,tn,*) <-> (tb*tn,*) reshapes are layout no-ops.  Large N: 128-multiple
    tiles so the output stores stay lane-dense and VMEM stays bounded."""
    if n <= target:
        n_p = _round_up(n, _SUB)
        return n_p, n_p
    t = (target // _LANE) * _LANE
    while t >= _LANE and n % t:
        t -= _LANE
    if t >= _LANE:
        return t, n
    n_p = _round_up(n, _LANE)
    t = (target // _LANE) * _LANE
    while n_p % t:
        t -= _LANE
    return t, n_p


# ---------------------------------------------------------------------------
# Parameter preparation (done ONCE, outside the per-forward hot path).
# ---------------------------------------------------------------------------

def prepare_fnn_params(params):
    """Zero-pad hidden/output feature dims to lane multiples and cast weights
    to bf16 once.  Zero weight rows/cols + zero bias + ReLU(0)=0 keep padded
    lanes exactly zero, so they are inert in the final combine.  The first
    layer's input dim is left unpadded (activations are fed unpadded)."""
    prepared = []
    for li, (w, b) in enumerate(params):
        din, dout = w.shape
        din_p = din if li == 0 else _round_up(din, _LANE)
        dout_p = _round_up(dout, _LANE)
        w_p = jnp.zeros((din_p, dout_p), jnp.float32).at[:din, :dout].set(w)
        b_p = jnp.zeros((1, dout_p), jnp.float32).at[0, :dout].set(b)
        prepared.append((w_p.astype(jnp.bfloat16), b_p))
    return prepared


def init_fnn_params(key, layer_sizes):
    """Matches nn.Linear default init; weights stored (in, out)."""
    params = []
    for i in range(1, len(layer_sizes)):
        fan_in, fan_out = layer_sizes[i - 1], layer_sizes[i]
        key, kw, kb = jax.random.split(key, 3)
        bound = 1.0 / jnp.sqrt(jnp.float32(fan_in))
        w = jax.random.uniform(kw, (fan_in, fan_out), jnp.float32, -bound, bound)
        b = jax.random.uniform(kb, (fan_out,), jnp.float32, -bound, bound)
        params.append((w, b))
    return params


# ---------------------------------------------------------------------------
# Branch FNN: Linear -> ReLU -> ... -> Linear fused in one pallas_call.
# ---------------------------------------------------------------------------

def _fnn_kernel(n_layers, *refs):
    # refs = (x, w0, b0, ..., w_{L-1}, b_{L-1}, out)
    x_ref, o_ref = refs[0], refs[-1]
    y = x_ref[...]                                       # (tb, Din) bf16
    for idx in range(n_layers):
        w_ref = refs[1 + 2 * idx]                        # (Din_p, Dout_p) bf16
        b_ref = refs[2 + 2 * idx]                        # (1, Dout_p) f32
        y = jnp.dot(y.astype(jnp.bfloat16), w_ref[...],
                    preferred_element_type=jnp.float32)
        y = y + b_ref[...]                               # f32 epilogue
        if idx < n_layers - 1:
            y = jnp.maximum(y, 0.0)
    o_ref[...] = y.astype(o_ref.dtype)


def fnn_branch_pallas(prepared, x, b_pad, *, tile_b_target=256):
    """x: (B, d_in).  Returns (b_pad, p_pad) f32; padded rows/lanes sliced or
    ignored by the caller."""
    n_layers = len(prepared)
    B, d_in = x.shape
    p_pad = prepared[-1][0].shape[1]

    x = x.astype(jnp.bfloat16)
    if b_pad != B:
        x = jnp.pad(x, ((0, b_pad - B), (0, 0)))

    tb = _pick_divisor_tile(b_pad, _SUB, tile_b_target)
    grid = (b_pad // tb,)

    in_specs = [pl.BlockSpec((tb, d_in), lambda i: (i, 0))]
    inputs = [x]
    for (w_p, b_p) in prepared:
        # VMEM-resident across all batch tiles: block index is always (0, 0).
        in_specs.append(pl.BlockSpec(w_p.shape, lambda i: (0, 0)))
        in_specs.append(pl.BlockSpec(b_p.shape, lambda i: (0, 0)))
        inputs.extend([w_p, b_p])

    flops = 2 * b_pad * sum(w.shape[0] * w.shape[1] for (w, _) in prepared)
    bytes_accessed = int(x.size * 2
                         + sum(w.size * 2 + b.size * 4 for (w, b) in prepared)
                         + b_pad * p_pad * 4)

    return pl.pallas_call(
        functools.partial(_fnn_kernel, n_layers),
        out_shape=jax.ShapeDtypeStruct((b_pad, p_pad), jnp.float32),
        grid_spec=pltpu.PrefetchScalarGridSpec(
            num_scalar_prefetch=0,
            grid=grid,
            in_specs=in_specs,
            out_specs=pl.BlockSpec((tb, p_pad), lambda i: (i, 0)),
        ),
        compiler_params=pltpu.CompilerParams(
            dimension_semantics=("parallel",),
            vmem_limit_bytes=_VMEM_LIMIT_BYTES,
        ),
        cost_estimate=pl.CostEstimate(
            flops=int(flops), transcendentals=0, bytes_accessed=bytes_accessed),
    )(*inputs)


# ---------------------------------------------------------------------------
# Fused trunk FNN + DeepONet combine in one pallas_call.
#   grid = (B_tiles, N_tiles); only the (tb, tn) result leaves VMEM.
# ---------------------------------------------------------------------------

def _trunk_combine_kernel(n_layers, *refs):
    # refs = (yb, x_trunk, w0, b0, ..., w_{L-1}, b_{L-1}, bias_last, out)
    yb_ref, xt_ref = refs[0], refs[1]
    bias_ref, o_ref = refs[-2], refs[-1]
    tb, tn, d = xt_ref.shape
    w0_ref, b0_ref = refs[2], refs[3]

    # Layer 0 without an MXU pass: the trunk coord dim d is tiny (=2), so do
    # d broadcast FMAs on the VPU on the 3-D block.  Keeps x_trunk unpadded
    # in HBM and avoids a K=2 matmul.
    x = xt_ref[...].astype(jnp.float32)                   # (tb, tn, d)
    w0 = w0_ref[...].astype(jnp.float32)                  # (d, h0_p)
    y = x[:, :, 0:1] * w0[0, :]
    for j in range(1, d):
        y = y + x[:, :, j:j + 1] * w0[j, :]
    y = y + b0_ref[...][None]                             # (1,1,h0_p) broadcast
    if n_layers > 1:
        y = jnp.maximum(y, 0.0)

    # Remaining layers on the MXU: collapse (tb, tn) into one row dim.
    # Layout no-op: tn is a sublane multiple and feature dims are lane-padded.
    y = y.reshape(tb * tn, y.shape[-1])
    for idx in range(1, n_layers):
        w_ref = refs[2 + 2 * idx]
        b_ref = refs[3 + 2 * idx]
        y = jnp.dot(y.astype(jnp.bfloat16), w_ref[...],
                    preferred_element_type=jnp.float32)
        y = y + b_ref[...]
        if idx < n_layers - 1:
            y = jnp.maximum(y, 0.0)

    # Fused DeepONet combine: contract the latent dim against the branch
    # features of this batch tile (padded lanes are zero on both sides).
    p_pad = y.shape[-1]
    yt = y.reshape(tb, tn, p_pad)
    yb = yb_ref[...]                                      # (tb, p_pad) f32
    out = jnp.sum(yt * yb[:, None, :], axis=-1)           # (tb, tn) f32
    o_ref[...] = (out + bias_ref[0]).astype(o_ref.dtype)


def trunk_combine_pallas(prepared_trunk, yb_p, x_trunk, bias_last,
                         *, tb, tn, b_pad, n_pad):
    n_layers = len(prepared_trunk)
    B, N, d = x_trunk.shape
    p_pad = prepared_trunk[-1][0].shape[1]
    assert yb_p.shape == (b_pad, p_pad)

    x = x_trunk.astype(jnp.bfloat16)
    if (b_pad, n_pad) != (B, N):
        x = jnp.pad(x, ((0, b_pad - B), (0, n_pad - N), (0, 0)))

    grid = (b_pad // tb, n_pad // tn)

    in_specs = [
        # Branch features: resident per batch tile (re-used across all N tiles).
        pl.BlockSpec((tb, p_pad), lambda i, j: (i, 0)),
        # Trunk input tile, unpadded (full) coord dim.
        pl.BlockSpec((tb, tn, d), lambda i, j: (i, j, 0)),
    ]
    inputs = [yb_p, x]
    for (w_p, b_p) in prepared_trunk:
        in_specs.append(pl.BlockSpec(w_p.shape, lambda i, j: (0, 0)))
        in_specs.append(pl.BlockSpec(b_p.shape, lambda i, j: (0, 0)))
        inputs.extend([w_p, b_p])
    in_specs.append(pl.BlockSpec(memory_space=pltpu.MemorySpace.SMEM))  # bias_last
    inputs.append(bias_last)

    rows = b_pad * n_pad
    flops = (2 * rows * sum(w.shape[0] * w.shape[1] for (w, _) in prepared_trunk)
             + 2 * rows * p_pad)
    bytes_accessed = int(x.size * 2 + yb_p.size * 4
                         + sum(w.size * 2 + b.size * 4 for (w, b) in prepared_trunk)
                         + rows * 4 + 4)

    return pl.pallas_call(
        functools.partial(_trunk_combine_kernel, n_layers),
        out_shape=jax.ShapeDtypeStruct((b_pad, n_pad), jnp.float32),
        grid_spec=pltpu.PrefetchScalarGridSpec(
            num_scalar_prefetch=0,
            grid=grid,
            in_specs=in_specs,
            out_specs=pl.BlockSpec((tb, tn), lambda i, j: (i, j)),
        ),
        compiler_params=pltpu.CompilerParams(
            dimension_semantics=("parallel", "parallel"),
            vmem_limit_bytes=_VMEM_LIMIT_BYTES,
        ),
        cost_estimate=pl.CostEstimate(
            flops=int(flops), transcendentals=0, bytes_accessed=bytes_accessed),
    )(*inputs)


# ---------------------------------------------------------------------------
# Full DeepONet forward.
# ---------------------------------------------------------------------------

def deeponet_pallas(prepared_branch, prepared_trunk, bias_last, x_branch, x_trunk,
                    *, rows_target=1024, branch_rows_target=256):
    """prepared_*: output of prepare_fnn_params (padded/bf16, done once)."""
    B, N, _ = x_trunk.shape
    p_b = prepared_branch[-1][0].shape[1]
    p_t = prepared_trunk[-1][0].shape[1]
    assert p_b == p_t, "branch/trunk latent widths must match"

    tn, n_pad = _plan_trunk_n(N)
    # ~rows_target trunk rows per grid step (bounded VMEM on v7x, big enough
    # to amortize the ~0.35us per-step cost on v5e/v6e).
    tb, b_pad = _plan_dim(B, _SUB, max(1, rows_target // tn))

    yb_p = fnn_branch_pallas(prepared_branch, x_branch, b_pad,
                             tile_b_target=branch_rows_target)       # (b_pad, p_pad)
    out_p = trunk_combine_pallas(prepared_trunk, yb_p, x_trunk, bias_last,
                                 tb=tb, tn=tn, b_pad=b_pad, n_pad=n_pad)
    return out_p[:B, :N]


# ---------------------------------------------------------------------------
# Plain-JAX reference matching the kernel numerics (bf16 MXU inputs, f32 acc).
# ---------------------------------------------------------------------------

def _fnn_ref(params, x):
    y = x
    n = len(params)
    for i, (w, b) in enumerate(params):
        y = jnp.dot(y.astype(jnp.bfloat16), w.astype(jnp.bfloat16),
                    preferred_element_type=jnp.float32) + b
        if i < n - 1:
            y = jnp.maximum(y, 0.0)
    return y


def deeponet_ref(branch_params, trunk_params, bias_last, x_branch, x_trunk):
    yb = _fnn_ref(branch_params, x_branch)
    B, N, d = x_trunk.shape
    yt = _fnn_ref(trunk_params, x_trunk.reshape(B * N, d)).reshape(B, N, -1)
    return jnp.sum(yt * yb[:, None, :], axis=-1) + bias_last[0]


if __name__ == "__main__":
    key = jax.random.PRNGKey(0)

    # Small shapes mirroring the original structure
    # (branch [N_xy,256,256,256,64], trunk [2,256,256,256,64]).
    layer_size_branch = [48, 64, 64, 64, 32]
    layer_size_trunk = [2, 64, 64, 64, 32]
    B, N = 4, 16

    kb, kt, kxb, kxt = jax.random.split(key, 4)
    branch_params = init_fnn_params(kb, layer_size_branch)
    trunk_params = init_fnn_params(kt, layer_size_trunk)
    bias_last = jnp.zeros((1,), jnp.float32)   # matches nn.Parameter(torch.zeros(1))

    x_branch = jax.random.normal(kxb, (B, layer_size_branch[0]), jnp.float32)
    x_trunk = jax.random.normal(kxt, (B, N, layer_size_trunk[0]), jnp.float32)

    # Pad + cast weights ONCE, outside the per-forward hot path.
    prep_branch = prepare_fnn_params(branch_params)
    prep_trunk = prepare_fnn_params(trunk_params)

    fwd = jax.jit(deeponet_pallas)
    out = jax.block_until_ready(
        fwd(prep_branch, prep_trunk, bias_last, x_branch, x_trunk))

    ref = deeponet_ref(branch_params, trunk_params, bias_last, x_branch, x_trunk)
    assert out.shape == (B, N)
    err = jnp.max(jnp.abs(out - ref))
    assert jnp.allclose(out, ref, atol=2e-3, rtol=2e-3), f"max abs err = {err}"

    print("KERNEL_OK")
</pallas_src>

<mosaic_0001>
module attributes {stable_mosaic.version = 11 : i64} {
  func.func @_fnn_kernel(%arg0: i32, %arg1: memref<4x48xbf16, #tpu.memory_space<vmem>>, %arg2: memref<48x128xbf16, #tpu.memory_space<vmem>>, %arg3: memref<1x128xf32, #tpu.memory_space<vmem>>, %arg4: memref<128x128xbf16, #tpu.memory_space<vmem>>, %arg5: memref<1x128xf32, #tpu.memory_space<vmem>>, %arg6: memref<128x128xbf16, #tpu.memory_space<vmem>>, %arg7: memref<1x128xf32, #tpu.memory_space<vmem>>, %arg8: memref<128x128xbf16, #tpu.memory_space<vmem>>, %arg9: memref<1x128xf32, #tpu.memory_space<vmem>>, %arg10: memref<4x128xf32, #tpu.memory_space<vmem>>) attributes {dimension_semantics = [#tpu.dimension_semantics<parallel>], iteration_bounds = array<i64: 1>, scalar_prefetch = 0 : i64, scratch_operands = 0 : i64, tpu.core_type = #tpu.core_type<tc>, window_params = [{transform_indices = @transform_0, window_bounds = array<i64: 4, 48>}, {pipeline_mode = #tpu.pipeline_mode<synchronous>, transform_indices = @transform_1, window_bounds = array<i64: 48, 128>}, {pipeline_mode = #tpu.pipeline_mode<synchronous>, transform_indices = @transform_2, window_bounds = array<i64: 1, 128>}, {pipeline_mode = #tpu.pipeline_mode<synchronous>, transform_indices = @transform_3, window_bounds = array<i64: 128, 128>}, {pipeline_mode = #tpu.pipeline_mode<synchronous>, transform_indices = @transform_4, window_bounds = array<i64: 1, 128>}, {pipeline_mode = #tpu.pipeline_mode<synchronous>, transform_indices = @transform_5, window_bounds = array<i64: 128, 128>}, {pipeline_mode = #tpu.pipeline_mode<synchronous>, transform_indices = @transform_6, window_bounds = array<i64: 1, 128>}, {pipeline_mode = #tpu.pipeline_mode<synchronous>, transform_indices = @transform_7, window_bounds = array<i64: 128, 128>}, {pipeline_mode = #tpu.pipeline_mode<synchronous>, transform_indices = @transform_8, window_bounds = array<i64: 1, 128>}, {transform_indices = @transform_9, window_bounds = array<i64: 4, 128>}]} {
    %c0 = arith.constant 0 : index
    %c0_0 = arith.constant 0 : index
    %0 = vector.load %arg1[%c0, %c0_0] : memref<4x48xbf16, #tpu.memory_space<vmem>>, vector<4x48xbf16>
    %c0_1 = arith.constant 0 : index
    %c0_2 = arith.constant 0 : index
    %1 = vector.load %arg2[%c0_1, %c0_2] : memref<48x128xbf16, #tpu.memory_space<vmem>>, vector<48x128xbf16>
    %cst = arith.constant dense<0.000000e+00> : vector<4x128xf32>
    %2 = tpu.matmul %0, %1, %cst {dimension_numbers = #tpu.dot_dimension_numbers<[1], [0], [0], [1], [0, 0, 1, 1], [], []>} : vector<4x48xbf16>, vector<48x128xbf16>, vector<4x128xf32> -> vector<4x128xf32>
    %c0_3 = arith.constant 0 : index
    %c0_4 = arith.constant 0 : index
    %3 = vector.load %arg3[%c0_3, %c0_4] : memref<1x128xf32, #tpu.memory_space<vmem>>, vector<1x128xf32>
    %4 = vector.broadcast %3 : vector<1x128xf32> to vector<4x128xf32>
    %5 = arith.addf %2, %4 : vector<4x128xf32>
    %cst_5 = arith.constant 0.000000e+00 : f32
    %6 = vector.broadcast %cst_5 : f32 to vector<4x128xf32>
    %7 = arith.maximumf %5, %6 : vector<4x128xf32>
    %8 = arith.truncf %7 : vector<4x128xf32> to vector<4x128xbf16>
    %c0_6 = arith.constant 0 : index
    %c0_7 = arith.constant 0 : index
    %9 = vector.load %arg4[%c0_6, %c0_7] : memref<128x128xbf16, #tpu.memory_space<vmem>>, vector<128x128xbf16>
    %cst_8 = arith.constant dense<0.000000e+00> : vector<4x128xf32>
    %10 = tpu.matmul %8, %9, %cst_8 {dimension_numbers = #tpu.dot_dimension_numbers<[1], [0], [0], [1], [0, 0, 1, 1], [], []>} : vector<4x128xbf16>, vector<128x128xbf16>, vector<4x128xf32> -> vector<4x128xf32>
    %c0_9 = arith.constant 0 : index
    %c0_10 = arith.constant 0 : index
    %11 = vector.load %arg5[%c0_9, %c0_10] : memref<1x128xf32, #tpu.memory_space<vmem>>, vector<1x128xf32>
    %12 = vector.broadcast %11 : vector<1x128xf32> to vector<4x128xf32>
    %13 = arith.addf %10, %12 : vector<4x128xf32>
    %cst_11 = arith.constant 0.000000e+00 : f32
    %14 = vector.broadcast %cst_11 : f32 to vector<4x128xf32>
    %15 = arith.maximumf %13, %14 : vector<4x128xf32>
    %16 = arith.truncf %15 : vector<4x128xf32> to vector<4x128xbf16>
    %c0_12 = arith.constant 0 : index
    %c0_13 = arith.constant 0 : index
    %17 = vector.load %arg6[%c0_12, %c0_13] : memref<128x128xbf16, #tpu.memory_space<vmem>>, vector<128x128xbf16>
    %cst_14 = arith.constant dense<0.000000e+00> : vector<4x128xf32>
    %18 = tpu.matmul %16, %17, %cst_14 {dimension_numbers = #tpu.dot_dimension_numbers<[1], [0], [0], [1], [0, 0, 1, 1], [], []>} : vector<4x128xbf16>, vector<128x128xbf16>, vector<4x128xf32> -> vector<4x128xf32>
    %c0_15 = arith.constant 0 : index
    %c0_16 = arith.constant 0 : index
    %19 = vector.load %arg7[%c0_15, %c0_16] : memref<1x128xf32, #tpu.memory_space<vmem>>, vector<1x128xf32>
    %20 = vector.broadcast %19 : vector<1x128xf32> to vector<4x128xf32>
    %21 = arith.addf %18, %20 : vector<4x128xf32>
    %cst_17 = arith.constant 0.000000e+00 : f32
    %22 = vector.broadcast %cst_17 : f32 to vector<4x128xf32>
    %23 = arith.maximumf %21, %22 : vector<4x128xf32>
    %24 = arith.truncf %23 : vector<4x128xf32> to vector<4x128xbf16>
    %c0_18 = arith.constant 0 : index
    %c0_19 = arith.constant 0 : index
    %25 = vector.load %arg8[%c0_18, %c0_19] : memref<128x128xbf16, #tpu.memory_space<vmem>>, vector<128x128xbf16>
    %cst_20 = arith.constant dense<0.000000e+00> : vector<4x128xf32>
    %26 = tpu.matmul %24, %25, %cst_20 {dimension_numbers = #tpu.dot_dimension_numbers<[1], [0], [0], [1], [0, 0, 1, 1], [], []>} : vector<4x128xbf16>, vector<128x128xbf16>, vector<4x128xf32> -> vector<4x128xf32>
    %c0_21 = arith.constant 0 : index
    %c0_22 = arith.constant 0 : index
    %27 = vector.load %arg9[%c0_21, %c0_22] : memref<1x128xf32, #tpu.memory_space<vmem>>, vector<1x128xf32>
    %28 = vector.broadcast %27 : vector<1x128xf32> to vector<4x128xf32>
    %29 = arith.addf %26, %28 : vector<4x128xf32>
    %c0_23 = arith.constant 0 : index
    %c0_24 = arith.constant 0 : index
    %30 = vector.load %arg10[%c0_23, %c0_24] : memref<4x128xf32, #tpu.memory_space<vmem>>, vector<4x128xf32>
    tpu.vector_store %arg10[%c0_23, %c0_24], %29 {strides = array<i32>} : memref<4x128xf32, #tpu.memory_space<vmem>>, vector<4x128xf32>,
    return
  }
  func.func @transform_0(%arg0: i32) -> (i32, i32) {
    %c0_i32 = arith.constant 0 : i32
    %c0_i32_0 = arith.constant 0 : i32
    return %arg0, %c0_i32 : i32, i32
  }
  func.func @transform_1(%arg0: i32) -> (i32, i32) {
    %c0_i32 = arith.constant 0 : i32
    %c0_i32_0 = arith.constant 0 : i32
    %c0_i32_1 = arith.constant 0 : i32
    return %c0_i32, %c0_i32_0 : i32, i32
  }
  func.func @transform_2(%arg0: i32) -> (i32, i32) {
    %c0_i32 = arith.constant 0 : i32
    %c0_i32_0 = arith.constant 0 : i32
    %c0_i32_1 = arith.constant 0 : i32
    return %c0_i32, %c0_i32_0 : i32, i32
  }
  func.func @transform_3(%arg0: i32) -> (i32, i32) {
    %c0_i32 = arith.constant 0 : i32
    %c0_i32_0 = arith.constant 0 : i32
    %c0_i32_1 = arith.constant 0 : i32
    return %c0_i32, %c0_i32_0 : i32, i32
  }
  func.func @transform_4(%arg0: i32) -> (i32, i32) {
    %c0_i32 = arith.constant 0 : i32
    %c0_i32_0 = arith.constant 0 : i32
    %c0_i32_1 = arith.constant 0 : i32
    return %c0_i32, %c0_i32_0 : i32, i32
  }
  func.func @transform_5(%arg0: i32) -> (i32, i32) {
    %c0_i32 = arith.constant 0 : i32
    %c0_i32_0 = arith.constant 0 : i32
    %c0_i32_1 = arith.constant 0 : i32
    return %c0_i32, %c0_i32_0 : i32, i32
  }
  func.func @transform_6(%arg0: i32) -> (i32, i32) {
    %c0_i32 = arith.constant 0 : i32
    %c0_i32_0 = arith.constant 0 : i32
    %c0_i32_1 = arith.constant 0 : i32
    return %c0_i32, %c0_i32_0 : i32, i32
  }
  func.func @transform_7(%arg0: i32) -> (i32, i32) {
    %c0_i32 = arith.constant 0 : i32
    %c0_i32_0 = arith.constant 0 : i32
    %c0_i32_1 = arith.constant 0 : i32
    return %c0_i32, %c0_i32_0 : i32, i32
  }
  func.func @transform_8(%arg0: i32) -> (i32, i32) {
    %c0_i32 = arith.constant 0 : i32
    %c0_i32_0 = arith.constant 0 : i32
    %c0_i32_1 = arith.constant 0 : i32
    return %c0_i32, %c0_i32_0 : i32, i32
  }
  func.func @transform_9(%arg0: i32) -> (i32, i32) {
    %c0_i32 = arith.constant 0 : i32
    %c0_i32_0 = arith.constant 0 : i32
    return %arg0, %c0_i32 : i32, i32
  }
}

module attributes {stable_mosaic.version = 11 : i64} {
  func.func @_trunk_combine_kernel(%arg0: i32, %arg1: i32, %arg2: memref<4x128xf32, #tpu.memory_space<vmem>>, %arg3: memref<4x16x2xbf16, #tpu.memory_space<vmem>>, %arg4: memref<2x128xbf16, #tpu.memory_space<vmem>>, %arg5: memref<1x128xf32, #tpu.memory_space<vmem>>, %arg6: memref<128x128xbf16, #tpu.memory_space<vmem>>, %arg7: memref<1x128xf32, #tpu.memory_space<vmem>>, %arg8: memref<128x128xbf16, #tpu.memory_space<vmem>>, %arg9: memref<1x128xf32, #tpu.memory_space<vmem>>, %arg10: memref<128x128xbf16, #tpu.memory_space<vmem>>, %arg11: memref<1x128xf32, #tpu.memory_space<vmem>>, %arg12: memref<1xf32, #tpu.memory_space<smem>>, %arg13: memref<4x16xf32, #tpu.memory_space<vmem>>) attributes {dimension_semantics = [#tpu.dimension_semantics<parallel>, #tpu.dimension_semantics<parallel>], iteration_bounds = array<i64: 1, 1>, scalar_prefetch = 0 : i64, scratch_operands = 0 : i64, tpu.core_type = #tpu.core_type<tc>, window_params = [{transform_indices = @transform_0, window_bounds = array<i64: 4, 128>}, {transform_indices = @transform_1, window_bounds = array<i64: 4, 16, 2>}, {pipeline_mode = #tpu.pipeline_mode<synchronous>, transform_indices = @transform_2, window_bounds = array<i64: 2, 128>}, {pipeline_mode = #tpu.pipeline_mode<synchronous>, transform_indices = @transform_3, window_bounds = array<i64: 1, 128>}, {pipeline_mode = #tpu.pipeline_mode<synchronous>, transform_indices = @transform_4, window_bounds = array<i64: 128, 128>}, {pipeline_mode = #tpu.pipeline_mode<synchronous>, transform_indices = @transform_5, window_bounds = array<i64: 1, 128>}, {pipeline_mode = #tpu.pipeline_mode<synchronous>, transform_indices = @transform_6, window_bounds = array<i64: 128, 128>}, {pipeline_mode = #tpu.pipeline_mode<synchronous>, transform_indices = @transform_7, window_bounds = array<i64: 1, 128>}, {pipeline_mode = #tpu.pipeline_mode<synchronous>, transform_indices = @transform_8, window_bounds = array<i64: 128, 128>}, {pipeline_mode = #tpu.pipeline_mode<synchronous>, transform_indices = @transform_9, window_bounds = array<i64: 1, 128>}, {transform_indices = @transform_10, window_bounds = array<i64: 1>}, {transform_indices = @transform_11, window_bounds = array<i64: 4, 16>}]} {
    %c0 = arith.constant 0 : index
    %c0_0 = arith.constant 0 : index
    %c0_1 = arith.constant 0 : index
    %0 = vector.load %arg3[%c0, %c0_0, %c0_1] : memref<4x16x2xbf16, #tpu.memory_space<vmem>>, vector<4x16x2xbf16>
    %1 = arith.extf %0 : vector<4x16x2xbf16> to vector<4x16x2xf32>
    %c0_2 = arith.constant 0 : index
    %c0_3 = arith.constant 0 : index
    %2 = vector.load %arg4[%c0_2, %c0_3] : memref<2x128xbf16, #tpu.memory_space<vmem>>, vector<2x128xbf16>
    %3 = arith.extf %2 : vector<2x128xbf16> to vector<2x128xf32>
    %4 = vector.extract_strided_slice %1 {offsets = [0, 0, 0], sizes = [4, 16, 1], strides = [1, 1, 1]} : vector<4x16x2xf32> to vector<4x16x1xf32>
    %5 = vector.extract_strided_slice %3 {offsets = [0, 0], sizes = [1, 128], strides = [1, 1]} : vector<2x128xf32> to vector<1x128xf32>
    %6 = vector.shape_cast %5 : vector<1x128xf32> to vector<128xf32>
    %7 = vector.shape_cast %6 : vector<128xf32> to vector<1x1x128xf32>
    %8 = vector.broadcast %4 : vector<4x16x1xf32> to vector<4x16x128xf32>
    %9 = vector.broadcast %7 : vector<1x1x128xf32> to vector<4x16x128xf32>
    %10 = arith.mulf %8, %9 : vector<4x16x128xf32>
    %11 = vector.extract_strided_slice %1 {offsets = [0, 0, 1], sizes = [4, 16, 1], strides = [1, 1, 1]} : vector<4x16x2xf32> to vector<4x16x1xf32>
    %12 = vector.extract_strided_slice %3 {offsets = [1, 0], sizes = [1, 128], strides = [1, 1]} : vector<2x128xf32> to vector<1x128xf32>
    %13 = vector.shape_cast %12 : vector<1x128xf32> to vector<128xf32>
    %14 = vector.shape_cast %13 : vector<128xf32> to vector<1x1x128xf32>
    %15 = vector.broadcast %11 : vector<4x16x1xf32> to vector<4x16x128xf32>
    %16 = vector.broadcast %14 : vector<1x1x128xf32> to vector<4x16x128xf32>
    %17 = arith.mulf %15, %16 : vector<4x16x128xf32>
    %18 = arith.addf %10, %17 : vector<4x16x128xf32>
    %c0_4 = arith.constant 0 : index
    %c0_5 = arith.constant 0 : index
    %19 = vector.load %arg5[%c0_4, %c0_5] : memref<1x128xf32, #tpu.memory_space<vmem>>, vector<1x128xf32>
    %20 = vector.shape_cast %19 : vector<1x128xf32> to vector<1x1x128xf32>
    %21 = vector.broadcast %20 : vector<1x1x128xf32> to vector<4x16x128xf32>
    %22 = arith.addf %18, %21 : vector<4x16x128xf32>
    %cst = arith.constant 0.000000e+00 : f32
    %23 = vector.broadcast %cst : f32 to vector<4x16x128xf32>
    %24 = arith.maximumf %22, %23 : vector<4x16x128xf32>
    %25 = vector.shape_cast %24 : vector<4x16x128xf32> to vector<64x128xf32>
    %26 = arith.truncf %25 : vector<64x128xf32> to vector<64x128xbf16>
    %c0_6 = arith.constant 0 : index
    %c0_7 = arith.constant 0 : index
    %27 = vector.load %arg6[%c0_6, %c0_7] : memref<128x128xbf16, #tpu.memory_space<vmem>>, vector<128x128xbf16>
    %cst_8 = arith.constant dense<0.000000e+00> : vector<64x128xf32>
    %28 = tpu.matmul %26, %27, %cst_8 {dimension_numbers = #tpu.dot_dimension_numbers<[1], [0], [0], [1], [0, 0, 1, 1], [], []>} : vector<64x128xbf16>, vector<128x128xbf16>, vector<64x128xf32> -> vector<64x128xf32>
    %c0_9 = arith.constant 0 : index
    %c0_10 = arith.constant 0 : index
    %29 = vector.load %arg7[%c0_9, %c0_10] : memref<1x128xf32, #tpu.memory_space<vmem>>, vector<1x128xf32>
    %30 = vector.broadcast %29 : vector<1x128xf32> to vector<64x128xf32>
    %31 = arith.addf %28, %30 : vector<64x128xf32>
    %cst_11 = arith.constant 0.000000e+00 : f32
    %32 = vector.broadcast %cst_11 : f32 to vector<64x128xf32>
    %33 = arith.maximumf %31, %32 : vector<64x128xf32>
    %34 = arith.truncf %33 : vector<64x128xf32> to vector<64x128xbf16>
    %c0_12 = arith.constant 0 : index
    %c0_13 = arith.constant 0 : index
    %35 = vector.load %arg8[%c0_12, %c0_13] : memref<128x128xbf16, #tpu.memory_space<vmem>>, vector<128x128xbf16>
    %cst_14 = arith.constant dense<0.000000e+00> : vector<64x128xf32>
    %36 = tpu.matmul %34, %35, %cst_14 {dimension_numbers = #tpu.dot_dimension_numbers<[1], [0], [0], [1], [0, 0, 1, 1], [], []>} : vector<64x128xbf16>, vector<128x128xbf16>, vector<64x128xf32> -> vector<64x128xf32>
    %c0_15 = arith.constant 0 : index
    %c0_16 = arith.constant 0 : index
    %37 = vector.load %arg9[%c0_15, %c0_16] : memref<1x128xf32, #tpu.memory_space<vmem>>, vector<1x128xf32>
    %38 = vector.broadcast %37 : vector<1x128xf32> to vector<64x128xf32>
    %39 = arith.addf %36, %38 : vector<64x128xf32>
    %cst_17 = arith.constant 0.000000e+00 : f32
    %40 = vector.broadcast %cst_17 : f32 to vector<64x128xf32>
    %41 = arith.maximumf %39, %40 : vector<64x128xf32>
    %42 = arith.truncf %41 : vector<64x128xf32> to vector<64x128xbf16>
    %c0_18 = arith.constant 0 : index
    %c0_19 = arith.constant 0 : index
    %43 = vector.load %arg10[%c0_18, %c0_19] : memref<128x128xbf16, #tpu.memory_space<vmem>>, vector<128x128xbf16>
    %cst_20 = arith.constant dense<0.000000e+00> : vector<64x128xf32>
    %44 = tpu.matmul %42, %43, %cst_20 {dimension_numbers = #tpu.dot_dimension_numbers<[1], [0], [0], [1], [0, 0, 1, 1], [], []>} : vector<64x128xbf16>, vector<128x128xbf16>, vector<64x128xf32> -> vector<64x128xf32>
    %c0_21 = arith.constant 0 : index
    %c0_22 = arith.constant 0 : index
    %45 = vector.load %arg11[%c0_21, %c0_22] : memref<1x128xf32, #tpu.memory_space<vmem>>, vector<1x128xf32>
    %46 = vector.broadcast %45 : vector<1x128xf32> to vector<64x128xf32>
    %47 = arith.addf %44, %46 : vector<64x128xf32>
    %48 = vector.shape_cast %47 : vector<64x128xf32> to vector<4x16x128xf32>
    %c0_23 = arith.constant 0 : index
    %c0_24 = arith.constant 0 : index
    %49 = vector.load %arg2[%c0_23, %c0_24] : memref<4x128xf32, #tpu.memory_space<vmem>>, vector<4x128xf32>
    %50 = vector.shape_cast %49 : vector<4x128xf32> to vector<4x1x128xf32>
    %51 = vector.broadcast %50 : vector<4x1x128xf32> to vector<4x16x128xf32>
    %52 = arith.mulf %48, %51 : vector<4x16x128xf32>
    %cst_25 = arith.constant dense<0.000000e+00> : vector<4x16xf32>
    %53 = vector.multi_reduction <add>, %52, %cst_25 [2] : vector<4x16x128xf32> to vector<4x16xf32>
    %c0_26 = arith.constant 0 : index
    %54 = memref.load %arg12[%c0_26] : memref<1xf32, #tpu.memory_space<smem>>
    %55 = vector.broadcast %54 : f32 to vector<4x16xf32>
    %56 = arith.addf %53, %55 : vector<4x16xf32>
    %c0_27 = arith.constant 0 : index
    %c0_28 = arith.constant 0 : index
    %57 = vector.load %arg13[%c0_27, %c0_28] : memref<4x16xf32, #tpu.memory_space<vmem>>, vector<4x16xf32>
    tpu.vector_store %arg13[%c0_27, %c0_28], %56 {strides = array<i32>} : memref<4x16xf32, #tpu.memory_space<vmem>>, vector<4x16xf32>,
    return
  }
  func.func @transform_0(%arg0: i32, %arg1: i32) -> (i32, i32) {
    %c0_i32 = arith.constant 0 : i32
    %c0_i32_0 = arith.constant 0 : i32
    return %arg0, %c0_i32 : i32, i32
  }
  func.func @transform_1(%arg0: i32, %arg1: i32) -> (i32, i32, i32) {
    %c0_i32 = arith.constant 0 : i32
    %c0_i32_0 = arith.constant 0 : i32
    return %arg0, %arg1, %c0_i32 : i32, i32, i32
  }
  func.func @transform_2(%arg0: i32, %arg1: i32) -> (i32, i32) {
    %c0_i32 = arith.constant 0 : i32
    %c0_i32_0 = arith.constant 0 : i32
    %c0_i32_1 = arith.constant 0 : i32
    return %c0_i32, %c0_i32_0 : i32, i32
  }
  func.func @transform_3(%arg0: i32, %arg1: i32) -> (i32, i32) {
    %c0_i32 = arith.constant 0 : i32
    %c0_i32_0 = arith.constant 0 : i32
    %c0_i32_1 = arith.constant 0 : i32
    return %c0_i32, %c0_i32_0 : i32, i32
  }
  func.func @transform_4(%arg0: i32, %arg1: i32) -> (i32, i32) {
    %c0_i32 = arith.constant 0 : i32
    %c0_i32_0 = arith.constant 0 : i32
    %c0_i32_1 = arith.constant 0 : i32
    return %c0_i32, %c0_i32_0 : i32, i32
  }
  func.func @transform_5(%arg0: i32, %arg1: i32) -> (i32, i32) {
    %c0_i32 = arith.constant 0 : i32
    %c0_i32_0 = arith.constant 0 : i32
    %c0_i32_1 = arith.constant 0 : i32
    return %c0_i32, %c0_i32_0 : i32, i32
  }
  func.func @transform_6(%arg0: i32, %arg1: i32) -> (i32, i32) {
    %c0_i32 = arith.constant 0 : i32
    %c0_i32_0 = arith.constant 0 : i32
    %c0_i32_1 = arith.constant 0 : i32
    return %c0_i32, %c0_i32_0 : i32, i32
  }
  func.func @transform_7(%arg0: i32, %arg1: i32) -> (i32, i32) {
    %c0_i32 = arith.constant 0 : i32
    %c0_i32_0 = arith.constant 0 : i32
    %c0_i32_1 = arith.constant 0 : i32
    return %c0_i32, %c0_i32_0 : i32, i32
  }
  func.func @transform_8(%arg0: i32, %arg1: i32) -> (i32, i32) {
    %c0_i32 = arith.constant 0 : i32
    %c0_i32_0 = arith.constant 0 : i32
    %c0_i32_1 = arith.constant 0 : i32
    return %c0_i32, %c0_i32_0 : i32, i32
  }
  func.func @transform_9(%arg0: i32, %arg1: i32) -> (i32, i32) {
    %c0_i32 = arith.constant 0 : i32
    %c0_i32_0 = arith.constant 0 : i32
    %c0_i32_1 = arith.constant 0 : i32
    return %c0_i32, %c0_i32_0 : i32, i32
  }
  func.func @transform_10(%arg0: i32, %arg1: i32) -> i32 {
    %c0_i32 = arith.constant 0 : i32
    %c0_i32_0 = arith.constant 0 : i32
    return %c0_i32 : i32
  }
  func.func @transform_11(%arg0: i32, %arg1: i32) -> (i32, i32) {
    %c0_i32 = arith.constant 0 : i32
    return %arg0, %arg1 : i32, i32
  }
}

</mosaic_0001>

<bundles_post_ra>
// kernel: deeponet_pallas.2
= control target key start
LH: loop header
LB: loop body
LE: loop exit
PB: predicated region body
PF: predicated region fallthrough
CT: control target
= control target key end

     0   :  { %14 = vsyncpa [#allocation3], 0  ;;  %s900_s0 = inlined_call_operand.vmem [shape: bf16[4,48], index: 0, kind: input, shape index: {}]   ;;  %s901_s1 = inlined_call_operand.hbm [shape: bf16[48,128], index: 1, kind: input, shape index: {}]   ;;  %s902_s2 = inlined_call_operand.vmem [shape: f32[1,128], index: 2, kind: input, shape index: {}]   ;;  %s903_s3 = inlined_call_operand.hbm [shape: bf16[128,128], index: 3, kind: input, shape index: {}]   ;;  %s904_s4 = inlined_call_operand.vmem [shape: f32[1,128], index: 4, kind: input, shape index: {}]   ;;  %s905_s5 = inlined_call_operand.hbm [shape: bf16[128,128], index: 5, kind: input, shape index: {}]   ;;  %s906_s6 = inlined_call_operand.vmem [shape: f32[1,128], index: 6, kind: input, shape index: {}]   ;;  %s907_s7 = inlined_call_operand.hbm [shape: bf16[128,128], index: 7, kind: input, shape index: {}]   ;;  %s908_s8 = inlined_call_operand.vmem [shape: f32[1,128], index: 8, kind: input, shape index: {}]   ;;  %s909_s9 = inlined_call_operand.vmem [shape: f32[4,128], index: 9, kind: output, shape index: {}]  }
   0x1   :  { %15 = vsyncpa [#allocation5], 0 }
   0x2   :  { %16 = vsyncpa [#allocation8], 0  ;;  %s765_s30 = smov [#allocation4]   ;;  %s766_s11 = smov [#allocation2]  }
   0x3   :  { %s38_s10 = sshll.u32 %s765_s30, 4  ;;  %s24_s12 = sshll.u32 %s766_s11, 4  ;;  %s39_s10 = int_to_ptr.vmem [resolvable:$true] %s38_s10  ;;  %s25_s12 = int_to_ptr.vmem [resolvable:$true] %s24_s12 }
   0x4   :  { %s687_s13 = scalar_lea.vmem %s39_s10, 1024  ;;  %p692_p1 = scmp.lt.s32.totalorder %s39_s10, %s39_s10 }
   0x5   :  { %p688_p0 = scmp.ne.s32.totalorder %s39_s10, %s687_s13  ;;  %p693_p2 = scmp.lt.s32.totalorder %s687_s13, %s687_s13 }
   0x7   :  { %p694_p3 = por %p693_p2, %p692_p1 }
   0x9   :  { %p695_p4 = pnand %p694_p3, %p688_p0 }
   0xb   :  { %698 = shalt.err (!%p695_p4)
}
   0xc   :  { %s767_s14 = smov 64   ;;  %s768_s15 = smov 4  }
   0xd   :  { %44 = dma.hbm_to_vmem [thread:$0]  %s903_s3, 1024, %s39_s10, [#allocation5], %s767_s14, %s767_s14, %s768_s15  }
   0xe   :  { %s707_s18 = scalar_lea.vmem %s25_s12, 384  ;;  %p712_p6 = scmp.lt.s32.totalorder %s25_s12, %s25_s12 }
   0xf   :  { %p708_p5 = scmp.ne.s32.totalorder %s25_s12, %s707_s18  ;;  %p713_p7 = scmp.lt.s32.totalorder %s707_s18, %s707_s18 }
  0x11   :  { %p714_p8 = por %p713_p7, %p712_p6 }
  0x13   :  { %p715_p9 = pnand %p714_p8, %p708_p5 }
  0x15   :  { %718 = shalt.err (!%p715_p9)
}
  0x16   :  { %30 = dma.hbm_to_vmem [thread:$0]  %s901_s1, 384, %s25_s12, [#allocation3], %s767_s14, %s767_s14, %s768_s15  }
  0x17   :  { %s769_s21 = smov [#allocation6]   ;;  %s770_s23 = smov [#allocation7]  }
  0x18   :  { %s52_s22 = sshll.u32 %s769_s21, 4  ;;  %s66_s24 = sshll.u32 %s770_s23, 4  ;;  %s53_s22 = int_to_ptr.vmem [resolvable:$true] %s52_s22  ;;  %s67_s24 = int_to_ptr.vmem [resolvable:$true] %s66_s24 }
  0x19   :  { %s727_s3 = scalar_lea.vmem %s53_s22, 1024  ;;  %p732_p11 = scmp.lt.s32.totalorder %s53_s22, %s53_s22 }
  0x1a   :  { %p728_p10 = scmp.ne.s32.totalorder %s53_s22, %s727_s3  ;;  %p733_p12 = scmp.lt.s32.totalorder %s727_s3, %s727_s3 }
  0x1c   :  { %p734_p13 = por %p733_p12, %p732_p11 }
  0x1e   :  { %p735_p0 = pnand %p734_p13, %p728_p10 }
  0x20   :  { %738 = shalt.err (!%p735_p0)
}
  0x21   :  { %58 = dma.hbm_to_vmem [thread:$0]  %s905_s5, 1024, %s53_s22, [#allocation5], %s767_s14, %s767_s14, %s768_s15  }
  0x22   :  { %s747_s1 = scalar_lea.vmem %s67_s24, 1024  ;;  %p752_p2 = scmp.lt.s32.totalorder %s67_s24, %s67_s24 }
  0x23   :  { %p748_p1 = scmp.ne.s32.totalorder %s67_s24, %s747_s1  ;;  %p753_p3 = scmp.lt.s32.totalorder %s747_s1, %s747_s1 }
  0x25   :  { %p754_p4 = por %p753_p3, %p752_p2 }
  0x27   :  { %p755_p5 = pnand %p754_p4, %p748_p1 }
  0x29   :  { %758 = shalt.err (!%p755_p5)
}
  0x2a   :  { %72 = dma.hbm_to_vmem [thread:$0]  %s907_s7, 1024, %s67_s24, [#allocation8], %s767_s14, %s767_s14, %s768_s15  }
  0x2b   :  { %759 = dma.done.wait [#allocation3], 384  }
  0x2c   :  { %760 = vsyncadd [#allocation3], 4294966912 }
  0x2d   :  { %761 = dma.done.wait [#allocation5], 2048  }
  0x2e   :  { %762 = vsyncadd [#allocation5], 4294965248 }
  0x2f   :  { %763 = dma.done.wait [#allocation8], 1024  }
  0x30   :  { %764 = vsyncadd [#allocation8], 4294966272  ;;  %v771_v0 = vmov 0.0   ;;  %vm772_vm0 = vmmov 0   ;;  %v652_v1 = vld [vmem:[#allocation2 + $0x10] sm:$0xff]   ;;  %v653_v2 = vld [vmem:[#allocation2 + $0x8] sm:$0xff]  }
  0x31   :  { %574 = vmatprep.subr.bf16.mxu0 %v771_v0  ;;  %580 = vmatprep.mubr.msk.bf16.mxu0 %vm772_vm0, %v771_v0  ;;  %v655_v3 = vld [vmem:[#allocation4 + $0x38] sm:$0xff]   ;;  %v654_v4 = vld [vmem:[#allocation2] sm:$0xff]   ;;  %v656_v5 = vld [vmem:[#allocation4 + $0x30] sm:$0xff]   ;;  %vm120_vm1 = vcmask 392192  }
  0x32   :  { %584 = vmatprep.subr.bf16.mxu1 %v771_v0  ;;  %600 = vmatprep.mubr.msk.bf16.mxu1 %vm772_vm0, %v771_v0  ;;  %v88_v6 = vld [vmem:[%s900_s0] sm:$0x3]  ;;  %v658_v8 = vld [vmem:[#allocation4 + $0x20] sm:$0xff]   ;;  %v659_v9 = vld [vmem:[#allocation4 + $0x18] sm:$0xff]  }
  0x33   :  { %575 = vmatpush3.bf16.msra.mxu0 %v652_v1  ;;  %585 = vmatpush3.bf16.msra.mxu1 %v655_v3  ;;  %v657_v7 = vld [vmem:[#allocation4 + $0x28] sm:$0xff]   ;;  %v660_v10 = vld [vmem:[#allocation4 + $0x10] sm:$0xff]   ;;  %v662_v12 = vld [vmem:[#allocation4] sm:$0xff]  }
  0x34   :  { %576 = vmatprep.subr.bf16.mxu0 %v771_v0  ;;  %586 = vmatprep.subr.bf16.mxu1 %v771_v0  ;;  %v661_v11 = vld [vmem:[#allocation4 + $0x8] sm:$0xff]   ;;  %v663_v13 = vld [vmem:[#allocation6 + $0x38] sm:$0xff]   ;;  %v664_v14 = vld [vmem:[#allocation6 + $0x30] sm:$0xff]  }
  0x35   :  { %v665_v15 = vld [vmem:[#allocation6 + $0x28] sm:$0xff]   ;;  %v666_v16 = vld [vmem:[#allocation6 + $0x20] sm:$0xff]   ;;  %v667_v17 = vld [vmem:[#allocation6 + $0x18] sm:$0xff]  }
  0x36   :  { %v668_v18 = vld [vmem:[#allocation6 + $0x10] sm:$0xff]   ;;  %v511_v19 = vld [vmem:[%s902_s2] ss:$0 sm:$0xff]  ;;  %v670_v28 = vld [vmem:[#allocation6] sm:$0xff]  }
  0x37   :  { %577 = vmatpush3.bf16.msra.mxu0 %v653_v2  ;;  %587 = vmatpush3.bf16.msra.mxu1 %v656_v5  ;;  %v669_v27 = vld [vmem:[#allocation6 + $0x8] sm:$0xff]   ;;  %v671_v29 = vld [vmem:[#allocation7 + $0x38] sm:$0xff]   ;;  %v672_v30 = vld [vmem:[#allocation7 + $0x30] sm:$0xff]  }
  0x38   :  { %578 = vmatprep.subr.bf16.mxu0 %v771_v0  ;;  %588 = vmatprep.subr.bf16.mxu1 %v771_v0  ;;  %v673_v31 = vld [vmem:[#allocation7 + $0x28] sm:$0xff]   ;;  %v674_v32 = vld [vmem:[#allocation7 + $0x20] sm:$0xff]   ;;  %v675_v33 = vld [vmem:[#allocation7 + $0x18] sm:$0xff]  }
  0x39   :  { %v676_v34 = vld [vmem:[#allocation7 + $0x10] sm:$0xff]   ;;  %v516_v35 = vld [vmem:[%s904_s4] ss:$0 sm:$0xff]  ;;  %v678_v44 = vld [vmem:[#allocation7] sm:$0xff]  }
  0x3a   :  { %v677_v43 = vld [vmem:[#allocation7 + $0x8] sm:$0xff]  }
  0x3b   :  { %579 = vmatpush3.bf16.msra.mxu0 %v654_v4  ;;  %589 = vmatpush3.bf16.msra.mxu1 %v657_v7  ;;  %v525_v45 = vld [vmem:[%s906_s6] ss:$0 sm:$0xff] }
  0x3c   :  { %604 = vmatprep.subr.bf16.mxu0 %v771_v0  ;;  %590 = vmatprep.subr.bf16.mxu1 %v771_v0  ;;  %v534_v53 = vld [vmem:[%s908_s8] ss:$0 sm:$0xff] }
  0x3e   :  { %581 = vmatmul.mubr.msk.bf16.vlgmr.msra.gmra.mxu0 %vm120_vm1, %v88_v6 }
  0x3f   :  { %620 = vmatprep.mubr.msk.bf16.mxu0 %vm772_vm0, %v771_v0  ;;  %591 = vmatpush3.bf16.msra.mxu1 %v658_v8 }
  0x40   :  { %592 = vmatprep.subr.bf16.mxu1 %v771_v0  ;;  %605 = vmatpush3.bf16.msra.mxu0 %v663_v13 }
  0x41   :  { %606 = vmatprep.subr.bf16.mxu0 %v771_v0 }
  0x43   :  { %593 = vmatpush3.bf16.msra.mxu1 %v659_v9 }
  0x44   :  { %594 = vmatprep.subr.bf16.mxu1 %v771_v0  ;;  %607 = vmatpush3.bf16.msra.mxu0 %v664_v14 }
  0x45   :  { %608 = vmatprep.subr.bf16.mxu0 %v771_v0 }
  0x47   :  { %595 = vmatpush3.bf16.msra.mxu1 %v660_v10 }
  0x48   :  { %596 = vmatprep.subr.bf16.mxu1 %v771_v0  ;;  %609 = vmatpush3.bf16.msra.mxu0 %v665_v15 }
  0x49   :  { %610 = vmatprep.subr.bf16.mxu0 %v771_v0 }
  0x4b   :  { %597 = vmatpush3.bf16.msra.mxu1 %v661_v11 }
  0x4c   :  { %598 = vmatprep.subr.bf16.mxu1 %v771_v0  ;;  %611 = vmatpush3.bf16.msra.mxu0 %v666_v16 }
  0x4d   :  { %612 = vmatprep.subr.bf16.mxu0 %v771_v0 }
  0x4f   :  { %599 = vmatpush3.bf16.msra.mxu1 %v662_v12 }
  0x50   :  { %624 = vmatprep.subr.bf16.mxu1 %v771_v0  ;;  %613 = vmatpush3.bf16.msra.mxu0 %v667_v17 }
  0x51   :  { %614 = vmatprep.subr.bf16.mxu0 %v771_v0 }
  0x54   :  { %615 = vmatpush3.bf16.msra.mxu0 %v668_v18 }
  0x55   :  { %616 = vmatprep.subr.bf16.mxu0 %v771_v0 }
  0x58   :  { %617 = vmatpush3.bf16.msra.mxu0 %v669_v27 }
  0x59   :  { %618 = vmatprep.subr.bf16.mxu0 %v771_v0 }
  0x5c   :  { %619 = vmatpush3.bf16.msra.mxu0 %v670_v28 }
  0xfe   :  { %v158_v20 = vpop.f32.mrf.mxu0 }
  0xff   :  { %v159_v21 = vadd.f32 %v511_v19, %v158_v20 }
 0x100   :  { %v582_v22 = vpop.f32.mrf.mxu0 }
 0x101   :  { %v164_v23 = vmax.f32 %v159_v21, 0.0 }
 0x102   :  { %v161_v24 = vpop.f32.mrf.mxu0 }
 0x103   :  { %v165_v25 = vpack.c.bf16 %v164_v23, %v164_v23 }
 0x104   :  { %v583_v26 = vpop.f32.mrf.mxu0 }
 0x105   :  { %601 = vmatmul.mubr.bf16.vlgmr.msra.gmra.mxu1 %v165_v25 }
 0x106   :  { %640 = vmatprep.mubr.msk.bf16.mxu1 %vm772_vm0, %v771_v0  ;;  %625 = vmatpush3.bf16.msra.mxu1 %v671_v29 }
 0x107   :  { %626 = vmatprep.subr.bf16.mxu1 %v771_v0 }
 0x10a   :  { %627 = vmatpush3.bf16.msra.mxu1 %v672_v30 }
 0x10b   :  { %628 = vmatprep.subr.bf16.mxu1 %v771_v0 }
 0x10e   :  { %629 = vmatpush3.bf16.msra.mxu1 %v673_v31 }
 0x10f   :  { %630 = vmatprep.subr.bf16.mxu1 %v771_v0 }
 0x112   :  { %631 = vmatpush3.bf16.msra.mxu1 %v674_v32 }
 0x113   :  { %632 = vmatprep.subr.bf16.mxu1 %v771_v0 }
 0x116   :  { %633 = vmatpush3.bf16.msra.mxu1 %v675_v33 }
 0x117   :  { %634 = vmatprep.subr.bf16.mxu1 %v771_v0 }
 0x11a   :  { %635 = vmatpush3.bf16.msra.mxu1 %v676_v34 }
 0x11b   :  { %636 = vmatprep.subr.bf16.mxu1 %v771_v0 }
 0x11e   :  { %637 = vmatpush3.bf16.msra.mxu1 %v677_v43 }
 0x11f   :  { %638 = vmatprep.subr.bf16.mxu1 %v771_v0 }
 0x122   :  { %639 = vmatpush3.bf16.msra.mxu1 %v678_v44 }
 0x1c5   :  { %v271_v36 = vpop.f32.mrf.mxu1 }
 0x1c6   :  { %v272_v37 = vadd.f32 %v516_v35, %v271_v36 }
 0x1c7   :  { %v602_v38 = vpop.f32.mrf.mxu1 }
 0x1c8   :  { %v277_v39 = vmax.f32 %v272_v37, 0.0 }
 0x1c9   :  { %v274_v40 = vpop.f32.mrf.mxu1 }
 0x1ca   :  { %v278_v41 = vpack.c.bf16 %v277_v39, %v277_v39 }
 0x1cb   :  { %v603_v42 = vpop.f32.mrf.mxu1 }
 0x1cc   :  { %621 = vmatmul.mubr.bf16.vlgmr.msra.gmra.mxu0 %v278_v41 }
 0x28c   :  { %v384_v46 = vpop.f32.mrf.mxu0 }
 0x28d   :  { %v385_v47 = vadd.f32 %v525_v45, %v384_v46 }
 0x28e   :  { %v622_v48 = vpop.f32.mrf.mxu0 }
 0x28f   :  { %v390_v49 = vmax.f32 %v385_v47, 0.0 }
 0x290   :  { %v387_v50 = vpop.f32.mrf.mxu0 }
 0x291   :  { %v391_v51 = vpack.c.bf16 %v390_v49, %v390_v49 }
 0x292   :  { %v623_v52 = vpop.f32.mrf.mxu0 }
 0x293   :  { %641 = vmatmul.mubr.bf16.vlgmr.msra.gmra.mxu1 %v391_v51 }
 0x353   :  { %v497_v54 = vpop.f32.mrf.mxu1 }
 0x354   :  { %v498_v55 = vadd.f32 %v534_v53, %v497_v54 }
 0x355   :  { %v642_v56 = vpop.f32.mrf.mxu1 }
 0x356   :  { %503 = vst [vmem:[%s909_s9] sm:$0xf] %v498_v55 }
 0x357   :  { %v500_v57 = vpop.f32.mrf.mxu1 }
 0x359   :  { %v643_v58 = vpop.f32.mrf.mxu1 }
 0x35a   :  { %508 = vsyncpa [#allocation3], 1 }
 0x35b   :  { %509 = vsyncpa [#allocation5], 1 }
 0x35c   :  { %510 = vsyncpa [#allocation8], 1 }

// kernel: deeponet_pallas.3
= control target key start
LH: loop header
LB: loop body
LE: loop exit
PB: predicated region body
PF: predicated region fallthrough
CT: control target
= control target key end

     0   :  { %v1040_v2 = vmov 0   ;;  %v1041_v16 = vmov 1   ;;  %s1232_s0 = inlined_call_operand.vmem [shape: f32[4,128], index: 0, kind: input, shape index: {}]   ;;  %s1233_s1 = inlined_call_operand.vmem [shape: bf16[4,16,2], index: 1, kind: input, shape index: {}]   ;;  %s1234_s2 = inlined_call_operand.vmem [shape: bf16[2,128], index: 2, kind: input, shape index: {}]   ;;  %s1235_s3 = inlined_call_operand.vmem [shape: f32[1,128], index: 3, kind: input, shape index: {}]   ;;  %s1236_s4 = inlined_call_operand.vmem [shape: bf16[128,128], index: 4, kind: input, shape index: {}]   ;;  %s1237_s5 = inlined_call_operand.vmem [shape: f32[1,128], index: 5, kind: input, shape index: {}]   ;;  %s1238_s6 = inlined_call_operand.vmem [shape: bf16[128,128], index: 6, kind: input, shape index: {}]   ;;  %s1239_s7 = inlined_call_operand.vmem [shape: f32[1,128], index: 7, kind: input, shape index: {}]   ;;  %s1240_s8 = inlined_call_operand.vmem [shape: bf16[128,128], index: 8, kind: input, shape index: {}]   ;;  %s1241_s9 = inlined_call_operand.vmem [shape: f32[1,128], index: 9, kind: input, shape index: {}]   ;;  %s1242_s10 = inlined_call_operand.<no memory space> [shape: f32[1], index: 10, kind: input, shape index: {}]   ;;  %s1243_s11 = inlined_call_operand.hbm [shape: f32[4,16], index: 11, kind: output, shape index: {}]  }
   0x1   :  { %v818_v0 = vld [vmem:[%s1233_s1 + $0x8] sm:$0xff]   ;;  %v803_v1 = vld [vmem:[%s1233_s1] sm:$0xff]   ;;  %961 = vset.pattern.permute.xlu1 %v1040_v2  ;;  %949 = vset.pattern.permute.xlu0 %v1040_v2  ;;  %v819_v7 = vld [vmem:[%s1233_s1 + $0x10] sm:$0xff]  }
   0x2   :  { %v808_v3 = vunpack.c.l.bf16 %v818_v0  ;;  %v809_v4 = vunpack.c.h.bf16 %v818_v0  ;;  %v804_v5 = vunpack.c.l.bf16 %v803_v1  ;;  %v805_v6 = vunpack.c.h.bf16 %v803_v1  ;;  %v994_v8 = vld [vmem:[%s1236_s4 + $0x38] sm:$0xff]   ;;  %v995_v11 = vld [vmem:[%s1236_s4 + $0x30] sm:$0xff]   ;;  %v996_v15 = vld [vmem:[%s1236_s4 + $0x28] sm:$0xff]  }
   0x3   :  { %857 = vmatprep.subr.bf16.mxu0 %v994_v8  ;;  %v812_v12 = vunpack.c.l.bf16 %v819_v7  ;;  %v813_v13 = vunpack.c.h.bf16 %v819_v7  ;;  %v820_v14 = vld [vmem:[%s1233_s1 + $0x18] sm:$0xff]   ;;  %v997_v20 = vld [vmem:[%s1236_s4 + $0x20] sm:$0xff]   ;;  %v999_v23 = vld [vmem:[%s1236_s4 + $0x10] sm:$0xff]  }
   0x4   :  { %v962_v9 = vpack.i.bf16 %v809_v4, %v808_v3  ;;  %v950_v10 = vpack.i.bf16 %v805_v6, %v804_v5  ;;  %858 = vmatpush3.bf16.msra.mxu0 %v994_v8  ;;  %v816_v18 = vunpack.c.l.bf16 %v820_v14  ;;  %v817_v19 = vunpack.c.h.bf16 %v820_v14  ;;  %v998_v22 = vld [vmem:[%s1236_s4 + $0x18] sm:$0xff]  }
   0x5   :  { %859 = vmatprep.subr.bf16.mxu0 %v995_v11  ;;  %v979_v17 = vpack.i.bf16 %v813_v13, %v812_v12 }
   0x6   :  { %963 = vperm.xlu1 %961, %v962_v9   ;;  %951 = vperm.xlu0 %949, %v950_v10   ;;  %v989_v21 = vpack.i.bf16 %v817_v19, %v816_v18 }
   0x8   :  { %860 = vmatpush3.bf16.msra.mxu0 %v995_v11 }
   0x9   :  { %861 = vmatprep.subr.bf16.mxu0 %v996_v15 }
   0xa   :  { %967 = vset.pattern.permute.xlu1 %v1041_v16  ;;  %955 = vset.pattern.permute.xlu0 %v1041_v16 }
   0xb   :  { %969 = vperm.xlu1 %967, %v962_v9   ;;  %957 = vperm.xlu0 %955, %v950_v10  }
   0xc   :  { %862 = vmatpush3.bf16.msra.mxu0 %v996_v15 }
   0xd   :  { %863 = vmatprep.subr.bf16.mxu0 %v997_v20 }
   0xf   :  { %973 = vset.pattern.permute.xlu1 %v1040_v2  ;;  %980 = vperm.xlu0 %955, %v979_v17  }
  0x10   :  { %975 = vperm.xlu1 %973, %v979_v17   ;;  %864 = vmatpush3.bf16.msra.mxu0 %v997_v20 }
  0x11   :  { %865 = vmatprep.subr.bf16.mxu0 %v998_v22 }
  0x13   :  { %990 = vperm.xlu0 %955, %v989_v21  }
  0x14   :  { %985 = vperm.xlu1 %973, %v989_v21  }
  0x15   :  { %17 = vsyncpa [#allocation4], 0  ;;  %866 = vmatpush3.bf16.msra.mxu0 %v998_v22  ;;  %v1000_v24 = vld [vmem:[%s1236_s4 + $0x8] sm:$0xff]   ;;  %v1001_v25 = vld [vmem:[%s1236_s4] sm:$0xff]   ;;  %v99_v31 = vlaneseq  ;;  %vm721_vm0 = vcmask 130112   ;;  %vm750_vm1 = vcmask 1041409  }
  0x16   :  { %867 = vmatprep.subr.bf16.mxu0 %v999_v23  ;;  %v1002_v26 = vld [vmem:[%s1238_s6 + $0x38] sm:$0xff]   ;;  %v1003_v27 = vld [vmem:[%s1238_s6 + $0x30] sm:$0xff]   ;;  %v1004_v28 = vld [vmem:[%s1238_s6 + $0x28] sm:$0xff]   ;;  %vm752_vm2 = vcmask 1042434   ;;  %vm754_vm3 = vcmask 1043459   ;;  %vm757_vm4 = vcmask 125952  }
  0x17   :  { %881 = vmatprep.subr.bf16.mxu1 %v1002_v26  ;;  %v1005_v29 = vld [vmem:[%s1238_s6 + $0x20] sm:$0xff]   ;;  %v1006_v30 = vld [vmem:[%s1238_s6 + $0x18] sm:$0xff]   ;;  %v1156_v32 = vshrl.u32 %v99_v31, 7 }
  0x18   :  { %882 = vmatpush3.bf16.msra.mxu1 %v1002_v26  ;;  %v57_v33 = vld [vmem:[%s1234_s2] sm:$0x1] }
  0x19   :  { %868 = vmatpush3.bf16.msra.mxu0 %v999_v23  ;;  %883 = vmatprep.subr.bf16.mxu1 %v1003_v27  ;;  %v58_v34 = vunpack.c.l.bf16 %v57_v33  ;;  %v1162_v35 = vsub.s32 0, %v1156_v32  ;;  %v145_v38 = vsub.s32 1, %v1156_v32  ;;  %v773_v60 = vld [vmem:[%s1235_s3] ss:$0 sm:$0xff] }
  0x1a   :  { %869 = vmatprep.subr.bf16.mxu0 %v1000_v24 }
  0x1b   :  { %v102_v39 = vrot.slane %v58_v34, %v1162_v35  ;;  %v146_v42 = vrot.slane %v58_v34, %v145_v38 }
  0x1c   :  { %884 = vmatpush3.bf16.msra.mxu1 %v1003_v27 }
  0x1d   :  { %870 = vmatpush3.bf16.msra.mxu0 %v1000_v24  ;;  %885 = vmatprep.subr.bf16.mxu1 %v1004_v28 }
  0x1e   :  { %871 = vmatprep.subr.bf16.mxu0 %v1001_v25 }
  0x20   :  { %886 = vmatpush3.bf16.msra.mxu1 %v1004_v28 }
  0x21   :  { %872 = vmatpush3.bf16.msra.mxu0 %v1001_v25  ;;  %887 = vmatprep.subr.bf16.mxu1 %v1005_v29 }
  0x24   :  { %888 = vmatpush3.bf16.msra.mxu1 %v1005_v29 }
  0x25   :  { %889 = vmatprep.subr.bf16.mxu1 %v1006_v30 }
  0x28   :  { %890 = vmatpush3.bf16.msra.mxu1 %v1006_v30 }
  0x81   :  { %v964_v36 = vpop.permute.xlu1 %963  ;;  %v952_v37 = vpop.permute.xlu0 %951 }
  0x82   :  { %v966_v40 = vunpack.i.h.bf16 %v964_v36  ;;  %v965_v41 = vunpack.i.l.bf16 %v964_v36  ;;  %v954_v43 = vunpack.i.h.bf16 %v952_v37  ;;  %v953_v44 = vunpack.i.l.bf16 %v952_v37 }
  0x84   :  { %v106_v51 = vmul.f32 %v966_v40, %v102_v39  ;;  %v105_v52 = vmul.f32 %v965_v41, %v102_v39  ;;  %v104_v57 = vmul.f32 %v954_v43, %v102_v39  ;;  %v103_v58 = vmul.f32 %v953_v44, %v102_v39 }
  0x86   :  { %v970_v45 = vpop.permute.xlu1 %969  ;;  %v958_v46 = vpop.permute.xlu0 %957 }
  0x87   :  { %v972_v47 = vunpack.i.h.bf16 %v970_v45  ;;  %v971_v48 = vunpack.i.l.bf16 %v970_v45  ;;  %v960_v49 = vunpack.i.h.bf16 %v958_v46  ;;  %v959_v50 = vunpack.i.l.bf16 %v958_v46 }
  0x89   :  { %v150_v53 = vmul.f32 %v972_v47, %v146_v42  ;;  %v149_v54 = vmul.f32 %v971_v48, %v146_v42  ;;  %v148_v55 = vmul.f32 %v960_v49, %v146_v42  ;;  %v147_v56 = vmul.f32 %v959_v50, %v146_v42  ;;  %v1008_v48 = vld [vmem:[%s1238_s6 + $0x8] sm:$0xff]   ;;  %v1009_v49 = vld [vmem:[%s1238_s6] sm:$0xff]   ;;  %v1010_v50 = vld [vmem:[%s1240_s8 + $0x38] sm:$0xff]  }
  0x8a   :  { %v981_v59 = vpop.permute.xlu0 %980  ;;  %905 = vmatprep.subr.bf16.mxu0 %v1010_v50 }
  0x8b   :  { %v157_v61 = vadd.f32 %v149_v54, %v105_v52  ;;  %v158_v62 = vadd.f32 %v150_v53, %v106_v51  ;;  %v983_v63 = vunpack.i.h.bf16 %v981_v59  ;;  %v982_v0 = vunpack.i.l.bf16 %v981_v59  ;;  %v976_v1 = vpop.permute.xlu1 %975  ;;  %v1011_v51 = vld [vmem:[%s1240_s8 + $0x30] sm:$0xff]   ;;  %v1012_v52 = vld [vmem:[%s1240_s8 + $0x28] sm:$0xff]   ;;  %v1013_v53 = vld [vmem:[%s1240_s8 + $0x20] sm:$0xff]  }
  0x8c   :  { %v978_v2 = vunpack.i.h.bf16 %v976_v1  ;;  %v977_v3 = vunpack.i.l.bf16 %v976_v1  ;;  %v155_v4 = vadd.f32 %v147_v56, %v103_v58  ;;  %v156_v5 = vadd.f32 %v148_v55, %v104_v57  ;;  %v1014_v54 = vld [vmem:[%s1240_s8 + $0x18] sm:$0xff]   ;;  %v774_v57 = vld [vmem:[%s1237_s5] ss:$0 sm:$0xff] }
  0x8d   :  { %v152_v6 = vmul.f32 %v983_v63, %v146_v42  ;;  %v151_v7 = vmul.f32 %v982_v0, %v146_v42  ;;  %v172_v8 = vadd.f32 %v773_v60, %v157_v61  ;;  %v173_v9 = vadd.f32 %v773_v60, %v158_v62 }
  0x8e   :  { %v108_v10 = vmul.f32 %v978_v2, %v102_v39  ;;  %v107_v11 = vmul.f32 %v977_v3, %v102_v39  ;;  %v991_v12 = vpop.permute.xlu0 %990  ;;  %v170_v13 = vadd.f32 %v773_v60, %v155_v4  ;;  %v171_v14 = vadd.f32 %v773_v60, %v156_v5 }
  0x8f   :  { %v993_v15 = vunpack.i.h.bf16 %v991_v12  ;;  %v992_v16 = vunpack.i.l.bf16 %v991_v12  ;;  %v986_v17 = vpop.permute.xlu1 %985  ;;  %v180_v18 = vmax.f32 %v172_v8, 0.0  ;;  %v181_v19 = vmax.f32 %v173_v9, 0.0 }
  0x90   :  { %v159_v20 = vadd.f32 %v151_v7, %v107_v11  ;;  %v160_v21 = vadd.f32 %v152_v6, %v108_v10  ;;  %v988_v22 = vunpack.i.h.bf16 %v986_v17  ;;  %v987_v23 = vunpack.i.l.bf16 %v986_v17 }
  0x91   :  { %v154_v24 = vmul.f32 %v993_v15, %v146_v42  ;;  %v153_v25 = vmul.f32 %v992_v16, %v146_v42  ;;  %v178_v26 = vmax.f32 %v170_v13, 0.0  ;;  %v179_v27 = vmax.f32 %v171_v14, 0.0 }
  0x92   :  { %v110_v28 = vmul.f32 %v988_v22, %v102_v39  ;;  %v109_v29 = vmul.f32 %v987_v23, %v102_v39  ;;  %v187_v30 = vpack.c.bf16 %v181_v19, %v180_v18  ;;  %v174_v33 = vadd.f32 %v773_v60, %v159_v20  ;;  %v1007_v39 = vld [vmem:[%s1238_s6 + $0x10] sm:$0xff]   ;;  %v1017_v22 = vld [vmem:[%s1240_s8] sm:$0xff]  }
  0x93   :  { %v186_v34 = vpack.c.bf16 %v179_v27, %v178_v26  ;;  %v175_v36 = vadd.f32 %v773_v60, %v160_v21  ;;  %891 = vmatprep.subr.bf16.mxu1 %v1007_v39  ;;  %v1015_v20 = vld [vmem:[%s1240_s8 + $0x10] sm:$0xff]   ;;  %v1016_v21 = vld [vmem:[%s1240_s8 + $0x8] sm:$0xff]  }
  0x94   :  { %v161_v37 = vadd.f32 %v153_v25, %v109_v29  ;;  %v162_v38 = vadd.f32 %v154_v24, %v110_v28  ;;  %v182_v40 = vmax.f32 %v174_v33, 0.0  ;;  %892 = vmatpush3.bf16.msra.mxu1 %v1007_v39  ;;  %v783_v25 = vld [vmem:[%s1239_s7] ss:$0 sm:$0xff] }
  0x95   :  { %873 = vmatprep.mubr.bf16.mxu0 %v186_v34  ;;  %v183_v41 = vmax.f32 %v175_v36, 0.0  ;;  %893 = vmatprep.subr.bf16.mxu1 %v1008_v48 }
  0x96   :  { %874 = vmatmul.mubr.bf16.vlgmr.msra.gmra.mxu0 %v187_v30  ;;  %v176_v43 = vadd.f32 %v773_v60, %v161_v37  ;;  %v177_v44 = vadd.f32 %v773_v60, %v162_v38 }
  0x97   :  { %v188_v45 = vpack.c.bf16 %v183_v41, %v182_v40  ;;  %906 = vmatpush3.bf16.msra.mxu0 %v1010_v50 }
  0x98   :  { %v184_v46 = vmax.f32 %v176_v43, 0.0  ;;  %v185_v47 = vmax.f32 %v177_v44, 0.0  ;;  %894 = vmatpush3.bf16.msra.mxu1 %v1008_v48  ;;  %907 = vmatprep.subr.bf16.mxu0 %v1011_v51 }
  0x99   :  { %877 = vmatprep.mubr.bf16.mxu0 %v188_v45  ;;  %895 = vmatprep.subr.bf16.mxu1 %v1009_v49 }
  0x9a   :  { %v189_v42 = vpack.c.bf16 %v185_v47, %v184_v46 }
  0x9b   :  { %908 = vmatpush3.bf16.msra.mxu0 %v1011_v51 }
  0x9c   :  { %896 = vmatpush3.bf16.msra.mxu1 %v1009_v49  ;;  %909 = vmatprep.subr.bf16.mxu0 %v1012_v52 }
  0x9d   :  { %929 = vmatprep.subr.bf16.mxu1 %v1010_v50 }
  0x9e   :  { %878 = vmatmul.mubr.bf16.gmra.mxu0 %v189_v42 }
  0x9f   :  { %910 = vmatpush3.bf16.msra.mxu0 %v1012_v52 }
  0xa0   :  { %911 = vmatprep.subr.bf16.mxu0 %v1013_v53 }
  0xa3   :  { %912 = vmatpush3.bf16.msra.mxu0 %v1013_v53 }
  0xa4   :  { %913 = vmatprep.subr.bf16.mxu0 %v1014_v54 }
  0xa7   :  { %914 = vmatpush3.bf16.msra.mxu0 %v1014_v54 }
  0xa8   :  { %915 = vmatprep.subr.bf16.mxu0 %v1015_v20 }
  0xab   :  { %916 = vmatpush3.bf16.msra.mxu0 %v1015_v20 }
  0xac   :  { %917 = vmatprep.subr.bf16.mxu0 %v1016_v21 }
  0xaf   :  { %918 = vmatpush3.bf16.msra.mxu0 %v1016_v21 }
  0xb0   :  { %919 = vmatprep.subr.bf16.mxu0 %v1017_v22 }
  0xb3   :  { %920 = vmatpush3.bf16.msra.mxu0 %v1017_v22 }
 0x156   :  { %v875_v55 = vpop.f32.mrf.mxu0 }
 0x157   :  { %v304_v61 = vadd.f32 %v875_v55, %v774_v57  ;;  %v1042_v55 = vmov 1966171168  }
 0x158   :  { %v295_v56 = vpop.f32.mrf.mxu0 }
 0x159   :  { %v296_v59 = vadd.f32 %v774_v57, %v295_v56  ;;  %v328_v4 = vmax.f32 %v304_v61, 0.0  ;;  %v633_v56 = vunpack.c.l.s4 %v1042_v55 }
 0x15a   :  { %v876_v58 = vpop.f32.mrf.mxu0 }
 0x15b   :  { %v307_v60 = vadd.f32 %v876_v58, %v774_v57  ;;  %v326_v2 = vmax.f32 %v296_v59, 0.0  ;;  %v801_v58 = vld.sshfl [vmem:[%s1232_s0] sm:$0x33 pattern:$0x75316420] }
 0x15c   :  { %v298_v62 = vpop.f32.mrf.mxu0  ;;  %v631_v59 = vcombine.high %v801_v58, %v801_v58 }
 0x15d   :  { %v299_v63 = vadd.f32 %v774_v57, %v298_v62  ;;  %v329_v0 = vmax.f32 %v307_v60, 0.0 }
 0x15e   :  { %v879_v1 = vpop.f32.mrf.mxu0 }
 0x15f   :  { %v327_v3 = vmax.f32 %v299_v63, 0.0  ;;  %v335_v7 = vpack.c.bf16 %v329_v0, %v328_v4  ;;  %v320_v11 = vadd.f32 %v879_v1, %v774_v57  ;;  %v792_v63 = vld [vmem:[%s1241_s9] ss:$0 sm:$0xff] }
 0x160   :  { %v311_v5 = vpop.f32.mrf.mxu0 }
 0x161   :  { %v334_v6 = vpack.c.bf16 %v327_v3, %v326_v2  ;;  %v312_v9 = vadd.f32 %v774_v57, %v311_v5  ;;  %v332_v17 = vmax.f32 %v320_v11, 0.0 }
 0x162   :  { %v880_v8 = vpop.f32.mrf.mxu0 }
 0x163   :  { %v323_v10 = vadd.f32 %v880_v8, %v774_v57  ;;  %897 = vmatprep.mubr.bf16.mxu1 %v334_v6  ;;  %v330_v15 = vmax.f32 %v312_v9, 0.0 }
 0x164   :  { %v314_v12 = vpop.f32.mrf.mxu0  ;;  %898 = vmatmul.mubr.bf16.vlgmr.msra.gmra.mxu1 %v335_v7 }
 0x165   :  { %v315_v13 = vadd.f32 %v774_v57, %v314_v12  ;;  %937 = vmatpush3.bf16.msra.mxu1 %v1010_v50  ;;  %v333_v14 = vmax.f32 %v323_v10, 0.0  ;;  %v634_v57 = vunpack.c.0.s8 %v633_v56 }
 0x166   :  { %930 = vmatprep.subr.bf16.mxu1 %v1011_v51 }
 0x167   :  { %v331_v16 = vmax.f32 %v315_v13, 0.0  ;;  %v337_v19 = vpack.c.bf16 %v333_v14, %v332_v17  ;;  %v637_v60 = vsub.s32 %v634_v57, %v1156_v32 }
 0x169   :  { %v336_v18 = vpack.c.bf16 %v331_v16, %v330_v15  ;;  %938 = vmatpush3.bf16.msra.mxu1 %v1011_v51  ;;  %v645_v61 = vrot.slane %v631_v59, %v637_v60  ;;  %v638_v62 = vrot.slane %v801_v58, %v637_v60 }
 0x16a   :  { %931 = vmatprep.subr.bf16.mxu1 %v1012_v52 }
 0x16b   :  { %901 = vmatprep.mubr.bf16.mxu1 %v336_v18  ;;  %v655_v0 = vrot.slane %v645_v61, %v1162_v35  ;;  %v651_v3 = vrot.slane %v638_v62, %v1162_v35  ;;  %v646_v10 = vcombine.high %v638_v62, %v638_v62  ;;  %v647_v17 = vcombine.high %v645_v61, %v645_v61 }
 0x16c   :  { %902 = vmatmul.mubr.bf16.gmra.mxu1 %v337_v19 }
 0x16d   :  { %939 = vmatpush3.bf16.msra.mxu1 %v1012_v52  ;;  %v659_v16 = vrot.slane %v646_v10, %v1162_v35 }
 0x16e   :  { %932 = vmatprep.subr.bf16.mxu1 %v1013_v53 }
 0x171   :  { %940 = vmatpush3.bf16.msra.mxu1 %v1013_v53 }
 0x172   :  { %933 = vmatprep.subr.bf16.mxu1 %v1014_v54 }
 0x175   :  { %941 = vmatpush3.bf16.msra.mxu1 %v1014_v54 }
 0x176   :  { %934 = vmatprep.subr.bf16.mxu1 %v1015_v20 }
 0x179   :  { %942 = vmatpush3.bf16.msra.mxu1 %v1015_v20 }
 0x17a   :  { %935 = vmatprep.subr.bf16.mxu1 %v1016_v21 }
 0x17d   :  { %943 = vmatpush3.bf16.msra.mxu1 %v1016_v21 }
 0x17e   :  { %936 = vmatprep.subr.bf16.mxu1 %v1017_v22 }
 0x181   :  { %944 = vmatpush3.bf16.msra.mxu1 %v1017_v22 }
 0x224   :  { %v899_v23 = vpop.f32.mrf.mxu1 }
 0x225   :  { %v452_v29 = vadd.f32 %v899_v23, %v783_v25  ;;  %v663_v23 = vrot.slane %v647_v17, %v1162_v35  ;;  %v693_v35 = vstv %s1242_s10  ;;  %s1043_s10 = smov [#allocation3]  }
 0x226   :  { %v443_v24 = vpop.f32.mrf.mxu1  ;;  %s765_s15 = sshll.u32 %s1043_s10, 4  ;;  %s766_s15 = int_to_ptr.vmem [resolvable:$true] %s765_s15 }
 0x227   :  { %v444_v27 = vadd.f32 %v783_v25, %v443_v24  ;;  %v476_v40 = vmax.f32 %v452_v29, 0.0  ;;  %s1018_s16 = scalar_lea.vmem %s766_s15, 64  ;;  %p1023_p1 = scmp.lt.s32.totalorder %s766_s15, %s766_s15 }
 0x228   :  { %v900_v26 = vpop.f32.mrf.mxu1  ;;  %p1019_p0 = scmp.ne.s32.totalorder %s766_s15, %s1018_s16  ;;  %p1024_p2 = scmp.lt.s32.totalorder %s1018_s16, %s1018_s16 }
 0x229   :  { %v455_v28 = vadd.f32 %v900_v26, %v783_v25  ;;  %v474_v37 = vmax.f32 %v444_v27, 0.0 }
 0x22a   :  { %v446_v30 = vpop.f32.mrf.mxu1  ;;  %p1025_p3 = por %p1024_p2, %p1023_p1 }
 0x22b   :  { %v447_v33 = vadd.f32 %v783_v25, %v446_v30  ;;  %v477_v34 = vmax.f32 %v455_v28, 0.0 }
 0x22c   :  { %v903_v36 = vpop.f32.mrf.mxu1  ;;  %p1026_p4 = pnand %p1025_p3, %p1019_p0 }
 0x22d   :  { %v475_v38 = vmax.f32 %v447_v33, 0.0  ;;  %v483_v44 = vpack.c.bf16 %v477_v34, %v476_v40  ;;  %v468_v42 = vadd.f32 %v903_v36, %v783_v25  ;;  %v711_v34 = vand.u32 127, %v99_v31 }
 0x22e   :  { %v459_v41 = vpop.f32.mrf.mxu1 }
 0x22f   :  { %v482_v43 = vpack.c.bf16 %v475_v38, %v474_v37  ;;  %v460_v46 = vadd.f32 %v783_v25, %v459_v41  ;;  %v480_v52 = vmax.f32 %v468_v42, 0.0  ;;  %v716_v37 = vadd.s32 4294967288, %v711_v34 }
 0x230   :  { %v904_v45 = vpop.f32.mrf.mxu1 }
 0x231   :  { %v471_v47 = vadd.f32 %v904_v45, %v783_v25  ;;  %921 = vmatprep.mubr.bf16.mxu0 %v482_v43  ;;  %v478_v50 = vmax.f32 %v460_v46, 0.0  ;;  %v719_v41 = vsub.s32 %v716_v37, %v1156_v32  ;;  %v714_v45 = vsub.s32 %v711_v34, %v1156_v32 }
 0x232   :  { %v462_v39 = vpop.f32.mrf.mxu1  ;;  %922 = vmatmul.mubr.bf16.vlgmr.msra.gmra.mxu0 %v483_v44 }
 0x233   :  { %v463_v48 = vadd.f32 %v783_v25, %v462_v39  ;;  %v481_v49 = vmax.f32 %v471_v47, 0.0 }
 0x235   :  { %v479_v51 = vmax.f32 %v463_v48, 0.0  ;;  %v485_v54 = vpack.c.bf16 %v481_v49, %v480_v52 }
 0x237   :  { %v484_v53 = vpack.c.bf16 %v479_v51, %v478_v50 }
 0x239   :  { %925 = vmatprep.mubr.bf16.mxu1 %v484_v53 }
 0x23a   :  { %926 = vmatmul.mubr.bf16.vlgmr.msra.gmra.mxu1 %v485_v54 }
 0x2f2   :  { %v923_v1 = vpop.f32.mrf.mxu0 }
 0x2f3   :  { %v600_v2 = vadd.f32 %v923_v1, %v792_v63 }
 0x2f4   :  { %v591_v4 = vpop.f32.mrf.mxu0 }
 0x2f5   :  { %v592_v5 = vadd.f32 %v792_v63, %v591_v4  ;;  %v670_v6 = vmul.f32 %v655_v0, %v600_v2 }
 0x2f6   :  { %v924_v7 = vpop.f32.mrf.mxu0 }
 0x2f7   :  { %v603_v8 = vadd.f32 %v924_v7, %v792_v63  ;;  %680 = vadd.xlane.f32.xlu0 %v670_v6  ;;  %v668_v9 = vmul.f32 %v651_v3, %v592_v5 }
 0x2f8   :  { %v594_v11 = vpop.f32.mrf.mxu0 }
 0x2f9   :  { %v595_v12 = vadd.f32 %v792_v63, %v594_v11  ;;  %676 = vadd.xlane.f32.xlu1 %v668_v9  ;;  %v671_v15 = vmul.f32 %v655_v0, %v603_v8 }
 0x2fa   :  { %v927_v13 = vpop.f32.mrf.mxu1 }
 0x2fb   :  { %v669_v14 = vmul.f32 %v651_v3, %v595_v12  ;;  %v616_v21 = vadd.f32 %v927_v13, %v792_v63 }
 0x2fc   :  { %v607_v18 = vpop.f32.mrf.mxu1 }
 0x2fd   :  { %v608_v19 = vadd.f32 %v792_v63, %v607_v18  ;;  %678 = vadd.xlane.f32.xlu0 %v669_v14  ;;  %682 = vadd.xlane.f32.xlu1 %v671_v15  ;;  %v674_v27 = vmul.f32 %v663_v23, %v616_v21 }
 0x2fe   :  { %v928_v20 = vpop.f32.mrf.mxu1 }
 0x2ff   :  { %v672_v22 = vmul.f32 %v659_v16, %v608_v19  ;;  %v619_v26 = vadd.f32 %v928_v20, %v792_v63 }
 0x300   :  { %v610_v24 = vpop.f32.mrf.mxu1 }
 0x301   :  { %v611_v25 = vadd.f32 %v792_v63, %v610_v24  ;;  %684 = vadd.xlane.f32.xlu0 %v672_v22  ;;  %v675_v29 = vmul.f32 %v663_v23, %v619_v26 }
 0x303   :  { %v673_v28 = vmul.f32 %v659_v16, %v611_v25 }
 0x305   :  { %688 = vadd.xlane.f32.xlu0 %v674_v27  ;;  %686 = vadd.xlane.f32.xlu1 %v673_v28 }
 0x309   :  { %690 = vadd.xlane.f32.xlu1 %v675_v29 }
 0x380   :  { %v681_v30 = vpop.xlane.xlu0 %680 }
 0x381   :  { %v696_v46 = vadd.f32 %v693_v35, %v681_v30 }
 0x382   :  { %v677_v33 = vpop.xlane.xlu1 %676 }
 0x383   :  { %v694_v47 = vadd.f32 %v693_v35, %v677_v33  ;;  %v726_v51 = vrot.slane %v696_v46, %v714_v45 }
 0x385   :  { %v715_v52 = vrot.slane %v694_v47, %v714_v45 }
 0x386   :  { %v679_v36 = vpop.xlane.xlu0 %678  ;;  %v683_v38 = vpop.xlane.xlu1 %682 }
 0x387   :  { %v695_v43 = vadd.f32 %v693_v35, %v679_v36  ;;  %v697_v44 = vadd.f32 %v693_v35, %v683_v38 }
 0x389   :  { %v720_v31 = vrot.slane %v695_v43, %v719_v41  ;;  %v730_v49 = vrot.slane %v697_v44, %v719_v41 }
 0x38a   :  { %v685_v40 = vpop.xlane.xlu0 %684 }
 0x38b   :  { %v698_v42 = vadd.f32 %v693_v35, %v685_v40  ;;  %v722_v57 = vsel %vm721_vm0, %v720_v31, %v715_v52  ;;  %v731_v58 = vsel %vm721_vm0, %v730_v49, %v726_v51 }
 0x38c   :  { %v751_v62 = vsel %vm750_vm1, %v731_v58, %v722_v57 }
 0x38d   :  { %v735_v55 = vrot.slane %v698_v42, %v714_v45 }
 0x38e   :  { %v689_v39 = vpop.xlane.xlu0 %688  ;;  %v687_v48 = vpop.xlane.xlu1 %686 }
 0x38f   :  { %v699_v50 = vadd.f32 %v693_v35, %v687_v48  ;;  %v700_v53 = vadd.f32 %v693_v35, %v689_v39 }
 0x391   :  { %v739_v54 = vrot.slane %v699_v50, %v719_v41  ;;  %v744_v60 = vrot.slane %v700_v53, %v714_v45 }
 0x392   :  { %v691_v56 = vpop.xlane.xlu1 %690 }
 0x393   :  { %v701_v32 = vadd.f32 %v693_v35, %v691_v56  ;;  %v740_v59 = vsel %vm721_vm0, %v739_v54, %v735_v55 }
 0x394   :  { %v753_v0 = vsel %vm752_vm2, %v740_v59, %v751_v62 }
 0x395   :  { %v748_v61 = vrot.slane %v701_v32, %v719_v41 }
 0x397   :  { %v749_v63 = vsel %vm721_vm0, %v748_v61, %v744_v60 }
 0x398   :  { %v755_v1 = vsel %vm754_vm3, %v749_v63, %v753_v0 }
 0x399   :  { %758 = vst.msk [vmem:[#allocation3] sm:$0xf] %vm757_vm4, %v755_v1 }
 0x39a   :  { %1029 = shalt.err (!%p1026_p4)
}
 0x39b   :  { %768 = dma.vmem_to_hbm [thread:$0]  %s766_s15, 64, %s1243_s11, [#allocation4]  }
 0x39c   :  { %1038 = dma.done.wait [#allocation4], 64  }
 0x39d   :  { %1039 = vsyncadd [#allocation4], 4294967232 }
 0x39e   :  { %772 = vsyncpa [#allocation4], 1 }

</bundles_post_ra>
